<compile_context>
chip_gen: v7x
topology: tpu7x:2x2x1
jax: 0.10.0
libtpu: 0.0.40
codegen_flags: <defaults>
</compile_context>

<pallas_src>
import functools
import math

import jax
import jax.numpy as jnp
from jax.experimental import pallas as pl
from jax.experimental.pallas import tpu as pltpu

_COMPUTE_DTYPE = jnp.bfloat16           # MXU-native; accumulate in f32
_VMEM_LIMIT = 32 * 1024 * 1024          # safe on v5e/v6e/v7x


def _compiler_params():
    return pltpu.CompilerParams(
        dimension_semantics=("parallel",),
        vmem_limit_bytes=_VMEM_LIMIT)


def _choose_tile_m(m, target=512):
    """Row tile (multiple of 8 unless it is the full extent), ~target rows/step."""
    if m > target:
        return target                    # 512 is a multiple of 8
    if m >= 128 and m % 16 == 0:
        return m // 2                    # >=2 grid steps so v7x can use both TCs
    return m


def _choose_row_tile(n_rows, wo, target_px=512):
    """Tile over pooled row-groups; (tile * wo) stays a multiple of 8 unless full."""
    k = 8 // math.gcd(wo, 8)
    tb = max(k, (max(target_px // max(wo, 1), 1) // k) * k)
    if tb >= n_rows:
        half = n_rows // 2
        if n_rows % 2 == 0 and half > 0 and half % k == 0:
            return half
        return n_rows
    return tb


# ----------------------------------------------------------------------------
# Kernel 1: 1x1 conv + folded BN + ReLU  (conv1)
#   x_ref: (TM, Cin) bf16, w_ref: (Cin, Cout) bf16, scale/bias: (1, Cout) f32
# ----------------------------------------------------------------------------
def _pw_bn_relu_kernel(x_ref, w_ref, scale_ref, bias_ref, o_ref):
    y = jnp.dot(x_ref[...], w_ref[...], preferred_element_type=jnp.float32)
    y = y * scale_ref[...] + bias_ref[...]
    o_ref[...] = jnp.maximum(y, 0.0).astype(o_ref.dtype)


def conv1x1_bn_relu(x2d, w, scale, bias):
    m, cin = x2d.shape
    cout = w.shape[1]
    tile_m = _choose_tile_m(m)
    scale2 = scale.reshape(1, cout).astype(jnp.float32)
    bias2 = bias.reshape(1, cout).astype(jnp.float32)
    return pl.pallas_call(
        _pw_bn_relu_kernel,
        out_shape=jax.ShapeDtypeStruct((m, cout), x2d.dtype),
        grid=(pl.cdiv(m, tile_m),),
        in_specs=[
            pl.BlockSpec((tile_m, cin), lambda i: (i, 0)),
            pl.BlockSpec((cin, cout), lambda i: (0, 0)),
            pl.BlockSpec((1, cout), lambda i: (0, 0)),
            pl.BlockSpec((1, cout), lambda i: (0, 0)),
        ],
        out_specs=pl.BlockSpec((tile_m, cout), lambda i: (i, 0)),
        compiler_params=_compiler_params(),
    )(x2d, w, scale2, bias2)


# ----------------------------------------------------------------------------
# Kernel 2: 3x3 conv (pad=1, stride=1) + folded BN + ReLU  (conv2)
#   The padded image is fed as ONE flat (1, (H+3)*(W+2), Cin) buffer so every
#   tap (dh, dw) is a flat row-offset slice of the same 2-D ref; accumulation
#   happens over the padded width (2 junk columns per row dropped on store).
# ----------------------------------------------------------------------------
def _conv3x3_kernel(xf_ref, w_ref, scale_ref, bias_ref, o_ref, *, H, W):
    Wp = W + 2
    L = H * Wp
    cout = w_ref.shape[-1]
    acc = jnp.zeros((L, cout), jnp.float32)
    for dh in range(3):
        for dw in range(3):
            off = dh * Wp + dw                     # static flat row offset
            tap = xf_ref[0, pl.ds(off, L), :]      # (L, Cin) bf16
            acc = acc + jnp.dot(tap, w_ref[dh, dw],
                                preferred_element_type=jnp.float32)
    y = jnp.maximum(acc * scale_ref[...] + bias_ref[...], 0.0)
    y = y.reshape(H, Wp, cout)[:, :W, :].reshape(H * W, cout)   # drop junk cols
    o_ref[0, :, :] = y.astype(o_ref.dtype)


def conv3x3_bn_relu(x_nhwc, w_hwio, scale, bias):
    n, h, w, cin = x_nhwc.shape
    cout = w_hwio.shape[-1]
    wp = w + 2
    # (1, 2) bottom padding gives 2 extra flat rows so the dh=2/dw=2 tap slice
    # of the junk columns never reads out of bounds.
    xp = jnp.pad(x_nhwc, ((0, 0), (1, 2), (1, 1), (0, 0)))   # (n, h+3, w+2, cin)
    xf = xp.reshape(n, (h + 3) * wp, cin)                     # free reshape
    scale2 = scale.reshape(1, cout).astype(jnp.float32)
    bias2 = bias.reshape(1, cout).astype(jnp.float32)
    kernel = functools.partial(_conv3x3_kernel, H=h, W=w)
    out3d = pl.pallas_call(
        kernel,
        out_shape=jax.ShapeDtypeStruct((n, h * w, cout), x_nhwc.dtype),
        grid=(n,),
        in_specs=[
            pl.BlockSpec((1, (h + 3) * wp, cin), lambda i: (i, 0, 0)),
            pl.BlockSpec((3, 3, cin, cout), lambda i: (0, 0, 0, 0)),
            pl.BlockSpec((1, cout), lambda i: (0, 0)),
            pl.BlockSpec((1, cout), lambda i: (0, 0)),
        ],
        out_specs=pl.BlockSpec((1, h * w, cout), lambda i: (i, 0, 0)),
        compiler_params=_compiler_params(),
    )(xf, w_hwio, scale2, bias2)
    return out3d.reshape(n, h, w, cout)


# ----------------------------------------------------------------------------
# Kernel 3 (fused tail):
#   [avgpool(s)] + conv3(1x1) + bn3  +  [avgpool(s) + 1x1 + bn downsample | raw
#   identity]  + residual add + ReLU, all in one kernel.
#   Pooled inputs arrive as (TB, s, Wo, s, C) blocks (free host reshape); the
#   s*s mean is an in-kernel reduce.
# ----------------------------------------------------------------------------
def _pool_window(ref, pool_s):
    if pool_s == 1:
        return ref[...]                                      # (R, C) bf16
    x = ref[...]                                             # (TB, s, Wo, s, C)
    tb, _, wo, _, c = x.shape
    xs = x.astype(jnp.float32).sum(axis=1).sum(axis=2)       # (TB, Wo, C)
    xs = xs * (1.0 / (pool_s * pool_s))
    return xs.reshape(tb * wo, c).astype(x.dtype)


def _tail_ds_kernel(o2_ref, x_ref, w3_ref, wd_ref, s3_ref, b3_ref,
                    sd_ref, bd_ref, o_ref, *, pool_s):
    a = _pool_window(o2_ref, pool_s)
    b = _pool_window(x_ref, pool_s)
    y = jnp.dot(a, w3_ref[...], preferred_element_type=jnp.float32)
    y = y * s3_ref[...] + b3_ref[...]
    z = jnp.dot(b, wd_ref[...], preferred_element_type=jnp.float32)
    z = z * sd_ref[...] + bd_ref[...]
    o_ref[...] = jnp.maximum(y + z, 0.0).astype(o_ref.dtype)


def _tail_id_kernel(o2_ref, xid_ref, w3_ref, s3_ref, b3_ref, o_ref):
    y = jnp.dot(o2_ref[...], w3_ref[...], preferred_element_type=jnp.float32)
    y = y * s3_ref[...] + b3_ref[...]
    y = y + xid_ref[...].astype(jnp.float32)
    o_ref[...] = jnp.maximum(y, 0.0).astype(o_ref.dtype)


def tail_fused_downsample(out2, x, w3, wd, s3, b3, sd, bd, pool_s):
    n, h, w, cp = out2.shape
    cin = x.shape[-1]
    ce = w3.shape[1]
    ho, wo = h // pool_s, w // pool_s
    m = n * ho * wo
    s3v = s3.reshape(1, ce).astype(jnp.float32)
    b3v = b3.reshape(1, ce).astype(jnp.float32)
    sdv = sd.reshape(1, ce).astype(jnp.float32)
    bdv = bd.reshape(1, ce).astype(jnp.float32)

    if pool_s == 1:
        o2_in = out2.reshape(m, cp)
        x_in = x.reshape(m, cin)
        tile = _choose_tile_m(m)
        grid = (pl.cdiv(m, tile),)
        o2_spec = pl.BlockSpec((tile, cp), lambda i: (i, 0))
        x_spec = pl.BlockSpec((tile, cin), lambda i: (i, 0))
        out_spec = pl.BlockSpec((tile, ce), lambda i: (i, 0))
    else:
        nho = n * ho
        o2_in = out2.reshape(nho, pool_s, wo, pool_s, cp)    # free reshape
        x_in = x.reshape(nho, pool_s, wo, pool_s, cin)       # free reshape
        tb = _choose_row_tile(nho, wo)
        grid = (pl.cdiv(nho, tb),)
        o2_spec = pl.BlockSpec((tb, pool_s, wo, pool_s, cp),
                               lambda i: (i, 0, 0, 0, 0))
        x_spec = pl.BlockSpec((tb, pool_s, wo, pool_s, cin),
                              lambda i: (i, 0, 0, 0, 0))
        out_spec = pl.BlockSpec((tb * wo, ce), lambda i: (i, 0))

    kernel = functools.partial(_tail_ds_kernel, pool_s=pool_s)
    return pl.pallas_call(
        kernel,
        out_shape=jax.ShapeDtypeStruct((m, ce), jnp.float32),
        grid=grid,
        in_specs=[
            o2_spec, x_spec,
            pl.BlockSpec((cp, ce), lambda i: (0, 0)),
            pl.BlockSpec((cin, ce), lambda i: (0, 0)),
            pl.BlockSpec((1, ce), lambda i: (0, 0)),
            pl.BlockSpec((1, ce), lambda i: (0, 0)),
            pl.BlockSpec((1, ce), lambda i: (0, 0)),
            pl.BlockSpec((1, ce), lambda i: (0, 0)),
        ],
        out_specs=out_spec,
        compiler_params=_compiler_params(),
    )(o2_in, x_in, w3, wd, s3v, b3v, sdv, bdv)


def tail_fused_identity(out2, x, w3, s3, b3):
    n, h, w, cp = out2.shape
    cin = x.shape[-1]
    ce = w3.shape[1]
    m = n * h * w
    s3v = s3.reshape(1, ce).astype(jnp.float32)
    b3v = b3.reshape(1, ce).astype(jnp.float32)
    tile = _choose_tile_m(m)
    return pl.pallas_call(
        _tail_id_kernel,
        out_shape=jax.ShapeDtypeStruct((m, ce), jnp.float32),
        grid=(pl.cdiv(m, tile),),
        in_specs=[
            pl.BlockSpec((tile, cp), lambda i: (i, 0)),
            pl.BlockSpec((tile, cin), lambda i: (i, 0)),
            pl.BlockSpec((cp, ce), lambda i: (0, 0)),
            pl.BlockSpec((1, ce), lambda i: (0, 0)),
            pl.BlockSpec((1, ce), lambda i: (0, 0)),
        ],
        out_specs=pl.BlockSpec((tile, ce), lambda i: (i, 0)),
        compiler_params=_compiler_params(),
    )(out2.reshape(m, cp), x.reshape(m, cin), w3, s3v, b3v)


# ----------------------------------------------------------------------------
# Glue
# ----------------------------------------------------------------------------
def bottleneck_forward(x_nchw, params, stride):
    x = jnp.transpose(x_nchw, (0, 2, 3, 1)).astype(_COMPUTE_DTYPE)  # NCHW->NHWC
    n, h, w, cin = x.shape
    w1 = params["w1"].astype(_COMPUTE_DTYPE)
    w2 = params["w2"].astype(_COMPUTE_DTYPE)
    w3 = params["w3"].astype(_COMPUTE_DTYPE)
    planes = w1.shape[1]
    ce = w3.shape[1]

    # conv1 (1x1) + bn1 + relu
    out1 = conv1x1_bn_relu(x.reshape(n * h * w, cin), w1,
                           params["s1"], params["b1"])
    out1 = out1.reshape(n, h, w, planes)

    # conv2 (3x3, pad=1) + bn2 + relu
    out2 = conv3x3_bn_relu(out1, w2, params["s2"], params["b2"])

    # fused tail: avgpool + conv3 + bn3 (+ downsample branch) + add + relu
    s = stride if stride > 1 else 1
    ho, wo = h // s, w // s
    if "wd" in params:
        wd = params["wd"].astype(_COMPUTE_DTYPE)
        out = tail_fused_downsample(out2, x, w3, wd, params["s3"], params["b3"],
                                    params["sd"], params["bd"], s)
    else:
        # module guarantees a downsample whenever stride > 1, so s == 1 here
        out = tail_fused_identity(out2, x, w3, params["s3"], params["b3"])

    out = out.reshape(n, ho, wo, ce).astype(x_nchw.dtype)
    return jnp.transpose(out, (0, 3, 1, 2))                        # NHWC->NCHW


# ----------------------------------------------------------------------------
# Pure-JAX reference (mirrors the kernel's bf16-input / f32-accum numerics)
# ----------------------------------------------------------------------------
def bottleneck_reference(x_nchw, params, stride):
    cdt = _COMPUTE_DTYPE
    x = jnp.transpose(x_nchw, (0, 2, 3, 1)).astype(cdt)

    def mm(hh, ww):
        return jnp.einsum("nhwc,cd->nhwd", hh.astype(cdt), ww.astype(cdt),
                          preferred_element_type=jnp.float32)

    def bn(hh, s_, b_):
        return hh * s_ + b_

    def avgpool(hh, s_):
        if s_ == 1:
            return hh
        nn, h_, w_, c_ = hh.shape
        return hh.reshape(nn, h_ // s_, s_, w_ // s_, s_, c_).astype(
            jnp.float32).mean(axis=(2, 4))

    out = jax.nn.relu(bn(mm(x, params["w1"]), params["s1"], params["b1"]))
    out = out.astype(cdt)
    out = jax.lax.conv_general_dilated(
        out, params["w2"].astype(cdt), (1, 1), ((1, 1), (1, 1)),
        dimension_numbers=("NHWC", "HWIO", "NHWC"),
        preferred_element_type=jnp.float32)
    out = jax.nn.relu(bn(out, params["s2"], params["b2"])).astype(cdt)
    out = avgpool(out, stride)
    out = bn(mm(out, params["w3"]), params["s3"], params["b3"])
    if "wd" in params:
        idn = avgpool(x, stride)
        idn = bn(mm(idn, params["wd"]), params["sd"], params["bd"])
    else:
        idn = x.astype(jnp.float32)
    out = jax.nn.relu(out + idn)
    return jnp.transpose(out, (0, 3, 1, 2)).astype(x_nchw.dtype)


# ----------------------------------------------------------------------------
# Main
# ----------------------------------------------------------------------------
if __name__ == "__main__":
    N, inplanes, H, W = 2, 8, 16, 16
    planes, stride, expansion = 4, 2, 4

    key = jax.random.PRNGKey(0)
    keys = jax.random.split(key, 10)

    x = jax.random.normal(keys[0], (N, inplanes, H, W), jnp.float32)

    def bn_fold(k, c):
        k1, k2, k3, k4 = jax.random.split(k, 4)
        gamma = 1.0 + 0.1 * jax.random.normal(k1, (c,))
        beta = 0.1 * jax.random.normal(k2, (c,))
        mean = 0.1 * jax.random.normal(k3, (c,))
        var = 1.0 + 0.1 * jax.random.uniform(k4, (c,))
        scale = gamma / jnp.sqrt(var + 1e-5)
        bias = beta - mean * scale
        return scale.astype(jnp.float32), bias.astype(jnp.float32)

    s1, b1 = bn_fold(keys[5], planes)
    s2, b2 = bn_fold(keys[6], planes)
    s3, b3 = bn_fold(keys[7], planes * expansion)
    sd, bd = bn_fold(keys[8], planes * expansion)

    params = dict(
        w1=(0.2 * jax.random.normal(keys[1], (inplanes, planes))).astype(jnp.float32),
        w2=(0.2 * jax.random.normal(keys[2], (3, 3, planes, planes))).astype(jnp.float32),
        w3=(0.2 * jax.random.normal(keys[3], (planes, planes * expansion))).astype(jnp.float32),
        wd=(0.2 * jax.random.normal(keys[4], (inplanes, planes * expansion))).astype(jnp.float32),
        s1=s1, b1=b1, s2=s2, b2=b2, s3=s3, b3=b3, sd=sd, bd=bd,
    )

    out = bottleneck_forward(x, params, stride)
    out = jax.block_until_ready(out)

    ref = bottleneck_reference(x, params, stride)
    assert out.shape == (N, planes * expansion, H // stride, W // stride), out.shape
    max_err = float(jnp.max(jnp.abs(out - ref)))
    if max_err > 2e-2:
        raise AssertionError(f"mismatch vs reference, max abs err = {max_err}")

    print("KERNEL_OK")
</pallas_src>

<mosaic_0001>
module attributes {stable_mosaic.version = 11 : i64} {
  func.func @_pw_bn_relu_kernel(%arg0: i32, %arg1: memref<256x8xbf16, #tpu.memory_space<vmem>>, %arg2: memref<8x4xbf16, #tpu.memory_space<vmem>>, %arg3: memref<1x4xf32, #tpu.memory_space<vmem>>, %arg4: memref<1x4xf32, #tpu.memory_space<vmem>>, %arg5: memref<256x4xbf16, #tpu.memory_space<vmem>>) attributes {dimension_semantics = [#tpu.dimension_semantics<parallel>], iteration_bounds = array<i64: 2>, scalar_prefetch = 0 : i64, scratch_operands = 0 : i64, tpu.core_type = #tpu.core_type<tc>, window_params = [{transform_indices = @transform_0, window_bounds = array<i64: 256, 8>}, {pipeline_mode = #tpu.pipeline_mode<synchronous>, transform_indices = @transform_1, window_bounds = array<i64: 8, 4>}, {pipeline_mode = #tpu.pipeline_mode<synchronous>, transform_indices = @transform_2, window_bounds = array<i64: 1, 4>}, {pipeline_mode = #tpu.pipeline_mode<synchronous>, transform_indices = @transform_3, window_bounds = array<i64: 1, 4>}, {transform_indices = @transform_4, window_bounds = array<i64: 256, 4>}]} {
    %c0 = arith.constant 0 : index
    %c0_0 = arith.constant 0 : index
    %0 = vector.load %arg1[%c0, %c0_0] : memref<256x8xbf16, #tpu.memory_space<vmem>>, vector<256x8xbf16>
    %c0_1 = arith.constant 0 : index
    %c0_2 = arith.constant 0 : index
    %1 = vector.load %arg2[%c0_1, %c0_2] : memref<8x4xbf16, #tpu.memory_space<vmem>>, vector<8x4xbf16>
    %cst = arith.constant dense<0.000000e+00> : vector<256x4xf32>
    %2 = tpu.matmul %0, %1, %cst {dimension_numbers = #tpu.dot_dimension_numbers<[1], [0], [0], [1], [0, 0, 1, 1], [], []>} : vector<256x8xbf16>, vector<8x4xbf16>, vector<256x4xf32> -> vector<256x4xf32>
    %c0_3 = arith.constant 0 : index
    %c0_4 = arith.constant 0 : index
    %3 = vector.load %arg3[%c0_3, %c0_4] : memref<1x4xf32, #tpu.memory_space<vmem>>, vector<1x4xf32>
    %4 = vector.broadcast %3 : vector<1x4xf32> to vector<256x4xf32>
    %5 = arith.mulf %2, %4 : vector<256x4xf32>
    %c0_5 = arith.constant 0 : index
    %c0_6 = arith.constant 0 : index
    %6 = vector.load %arg4[%c0_5, %c0_6] : memref<1x4xf32, #tpu.memory_space<vmem>>, vector<1x4xf32>
    %7 = vector.broadcast %6 : vector<1x4xf32> to vector<256x4xf32>
    %8 = arith.addf %5, %7 : vector<256x4xf32>
    %cst_7 = arith.constant 0.000000e+00 : f32
    %9 = vector.broadcast %cst_7 : f32 to vector<256x4xf32>
    %10 = arith.maximumf %8, %9 : vector<256x4xf32>
    %11 = arith.truncf %10 : vector<256x4xf32> to vector<256x4xbf16>
    %c0_8 = arith.constant 0 : index
    %c0_9 = arith.constant 0 : index
    %12 = vector.load %arg5[%c0_8, %c0_9] : memref<256x4xbf16, #tpu.memory_space<vmem>>, vector<256x4xbf16>
    tpu.vector_store %arg5[%c0_8, %c0_9], %11 {strides = array<i32>} : memref<256x4xbf16, #tpu.memory_space<vmem>>, vector<256x4xbf16>,
    return
  }
  func.func @transform_0(%arg0: i32) -> (i32, i32) {
    %c0_i32 = arith.constant 0 : i32
    %c0_i32_0 = arith.constant 0 : i32
    return %arg0, %c0_i32 : i32, i32
  }
  func.func @transform_1(%arg0: i32) -> (i32, i32) {
    %c0_i32 = arith.constant 0 : i32
    %c0_i32_0 = arith.constant 0 : i32
    %c0_i32_1 = arith.constant 0 : i32
    return %c0_i32, %c0_i32_0 : i32, i32
  }
  func.func @transform_2(%arg0: i32) -> (i32, i32) {
    %c0_i32 = arith.constant 0 : i32
    %c0_i32_0 = arith.constant 0 : i32
    %c0_i32_1 = arith.constant 0 : i32
    return %c0_i32, %c0_i32_0 : i32, i32
  }
  func.func @transform_3(%arg0: i32) -> (i32, i32) {
    %c0_i32 = arith.constant 0 : i32
    %c0_i32_0 = arith.constant 0 : i32
    %c0_i32_1 = arith.constant 0 : i32
    return %c0_i32, %c0_i32_0 : i32, i32
  }
  func.func @transform_4(%arg0: i32) -> (i32, i32) {
    %c0_i32 = arith.constant 0 : i32
    %c0_i32_0 = arith.constant 0 : i32
    return %arg0, %c0_i32 : i32, i32
  }
}

</mosaic_0001>

<bundles_post_ra>
// kernel: tpu_custom_call.1
= control target key start
LH: loop header
LB: loop body
LE: loop exit
PB: predicated region body
PF: predicated region fallthrough
CT: control target
= control target key end

     0   :  { %s1077_s15 = smov 0   ;;  %s1278_s0 = inlined_call_operand.vmem [shape: bf16[512,8], index: 0, kind: input, shape index: {}]   ;;  %s1279_s1 = inlined_call_operand.vmem [shape: bf16[8,4], index: 1, kind: input, shape index: {}]   ;;  %s1280_s2 = inlined_call_operand.vmem [shape: f32[1,4], index: 2, kind: input, shape index: {}]   ;;  %s1281_s3 = inlined_call_operand.vmem [shape: f32[1,4], index: 3, kind: input, shape index: {}]   ;;  %s1282_s4 = inlined_call_operand.vmem [shape: bf16[512,4], index: 4, kind: output, shape index: {}]  }
   0x1 LB: > { %s856_s16 = sadd.s32 4294967295, %s1050_s15   ;;  %p860_p0 = scmp.ge.s32.totalorder %s1050_s15, 1  ;;  %s1050_s15 = sphi %s1077_s15, %s14_s15  }
   0x2   : > { %p163_p1 = scmp.lt.s32.totalorder %s1050_s15, 3 }
   0x4   : > { %p164_p2 = pnand %p860_p0, %p163_p1 }
   0x5   : > { %v234_v0 = vld [vmem:[%s1279_s1] sm:$0xf] (!%p164_p2)  ;;  %vm364_vm0 = vcmask (!%p164_p2), 1043456   ;;  %s861_s19 = sshll.u32 (!%p164_p2), %s856_s16, 5  ;;  %vm315_vm1 = vcmask (!%p164_p2), 64512   ;;  %vm767_vm2 = vcmask (!%p164_p2), 27648  }
   0x6   : > { %167 = sbr.rel (%p164_p2) target bundleno = 269 (0x10d), region = 36  ;;  %1018 = vmatprep.subr.msk.bf16.mxu0 (!%p164_p2), %vm364_vm0, %v234_v0  ;;  %1019 = vmatprep.subr.msk.bf16.mxu1 (!%p164_p2), %vm364_vm0, %v234_v0  ;;  %v366_v1 = vsel (!%p164_p2), %vm364_vm0, %v234_v0, 0  ;;  %p190_p3 = scmp.lt.s32.totalorder (!%p164_p2), %s861_s19, 63  ;;  %v1133_v18 = vld [vmem:[%s1280_s2] ss:$0 sm:$0xff] (!%p164_p2) }
   0x7   : > { %983 = vmatpush3.bf16.msra.mxu0 (!%p164_p2), %v366_v1  ;;  %1017 = vmatpush3.bf16.msra.mxu1 (!%p164_p2), %v366_v1  ;;  %v1138_v20 = vld [vmem:[%s1281_s3] ss:$0 sm:$0xff] (!%p164_p2) }
   0xd   : > { %s1284_s19 = smov (!%p190_p3, %s861_s19), 63 }
   0xe   : > { %s862_s20 = sshll.u32 %s1284_s19, 2 }
   0xf   : > { %s1096_s23 = scalar_lea.vmem %s1278_s0, %s862_s20  ;;  %s1158_s30 = scalar_lea.vmem %s1282_s4, %s862_s20 }
  0x10   : > { %v1028_v2 = vld [vmem:[%s1096_s23] sm:$0xff]   ;;  %v1030_v4 = vld [vmem:[%s1096_s23 + $0x8] sm:$0xff]   ;;  %v1032_v6 = vld [vmem:[%s1096_s23 + $0x10] sm:$0xff]  }
  0x11   : > { %v1029_v3 = vld [vmem:[%s1096_s23 + $0x40] sm:$0xff]   ;;  %984 = vmatprep.mubr.msk.bf16.mxu0 %vm315_vm1, %v1028_v2  ;;  %v1031_v5 = vld [vmem:[%s1096_s23 + $0x48] sm:$0xff]   ;;  %v1033_v7 = vld [vmem:[%s1096_s23 + $0x50] sm:$0xff]  }
  0x12   : > { %1000 = vmatprep.mubr.msk.bf16.mxu1 %vm315_vm1, %v1029_v3  ;;  %985 = vmatmul.mubr.msk.bf16.vlgmr.msra.gmra.mrb[0].mxu0 %vm315_vm1, %v1030_v4  ;;  %v1034_v8 = vld [vmem:[%s1096_s23 + $0x18] sm:$0xff]   ;;  %v1036_v10 = vld [vmem:[%s1096_s23 + $0x20] sm:$0xff]   ;;  %v1038_v12 = vld [vmem:[%s1096_s23 + $0x28] sm:$0xff]  }
  0x13   : > { %1001 = vmatmul.mubr.msk.bf16.vlgmr.msra.gmra.mrb[0].mxu1 %vm315_vm1, %v1031_v5  ;;  %988 = vmatprep.mubr.msk.bf16.mxu0 %vm315_vm1, %v1032_v6  ;;  %v1035_v9 = vld [vmem:[%s1096_s23 + $0x58] sm:$0xff]   ;;  %v1037_v11 = vld [vmem:[%s1096_s23 + $0x60] sm:$0xff]   ;;  %v1039_v13 = vld [vmem:[%s1096_s23 + $0x68] sm:$0xff]  }
  0x14   : > { %1004 = vmatprep.mubr.msk.bf16.mxu1 %vm315_vm1, %v1033_v7  ;;  %v1040_v14 = vld [vmem:[%s1096_s23 + $0x30] sm:$0xff]   ;;  %v1042_v16 = vld [vmem:[%s1096_s23 + $0x38] sm:$0xff]  }
  0x15   : > { %v1041_v15 = vld [vmem:[%s1096_s23 + $0x70] sm:$0xff]   ;;  %v1043_v17 = vld [vmem:[%s1096_s23 + $0x78] sm:$0xff]  }
  0x1a   : > { %989 = vmatmul.mubr.msk.bf16.gmra.mrb[4].mxu0 %vm315_vm1, %v1034_v8 }
  0x1b   : > { %1005 = vmatmul.mubr.msk.bf16.gmra.mrb[4].mxu1 %vm315_vm1, %v1035_v9  ;;  %992 = vmatprep.mubr.msk.bf16.mxu0 %vm315_vm1, %v1036_v10 }
  0x1c   : > { %1008 = vmatprep.mubr.msk.bf16.mxu1 %vm315_vm1, %v1037_v11 }
  0x22   : > { %993 = vmatmul.mubr.msk.bf16.gmra.mrb[8].mxu0 %vm315_vm1, %v1038_v12 }
  0x23   : > { %1009 = vmatmul.mubr.msk.bf16.gmra.mrb[8].mxu1 %vm315_vm1, %v1039_v13  ;;  %996 = vmatprep.mubr.msk.bf16.mxu0 %vm315_vm1, %v1040_v14 }
  0x24   : > { %1012 = vmatprep.mubr.msk.bf16.mxu1 %vm315_vm1, %v1041_v15 }
  0x2a   : > { %997 = vmatmul.mubr.msk.bf16.gmra.mrb[12].mxu0 %vm315_vm1, %v1042_v16 }
  0x2b   : > { %1013 = vmatmul.mubr.msk.bf16.gmra.mrb[12].mxu1 %vm315_vm1, %v1043_v17 }
  0xe5   : > { %v986_v19 = vpop.f32.mrb[0].mxu0 }
  0xe6   : > { %v538_v21 = vmul.f32 %v986_v19, %v1133_v18  ;;  %v1002_v22 = vpop.f32.mrb[0].mxu1  ;;  %v402_v23 = vpop.f32.mrb[1].mxu0 }
  0xe7   : > { %v554_v24 = vmul.f32 %v1002_v22, %v1133_v18  ;;  %v536_v25 = vmul.f32 %v1133_v18, %v402_v23  ;;  %v466_v26 = vpop.f32.mrb[1].mxu1  ;;  %v987_v27 = vpop.f32.mrb[2].mxu0 }
  0xe8   : > { %v577_v28 = vadd.f32 %v1138_v20, %v538_v21  ;;  %v552_v29 = vmul.f32 %v1133_v18, %v466_v26  ;;  %v539_v30 = vmul.f32 %v987_v27, %v1133_v18  ;;  %v1003_v31 = vpop.f32.mrb[2].mxu1  ;;  %v405_v32 = vpop.f32.mrb[3].mxu0 }
  0xe9   : > { %v593_v33 = vadd.f32 %v1138_v20, %v554_v24  ;;  %v575_v34 = vadd.f32 %v1138_v20, %v536_v25  ;;  %v555_v35 = vmul.f32 %v1003_v31, %v1133_v18  ;;  %v537_v36 = vmul.f32 %v1133_v18, %v405_v32  ;;  %v469_v37 = vpop.f32.mrb[3].mxu1 }
  0xea   : > { %v609_v38 = vmax.f32 %v577_v28, 0.0  ;;  %v591_v39 = vadd.f32 %v1138_v20, %v552_v29  ;;  %v578_v40 = vadd.f32 %v1138_v20, %v539_v30  ;;  %v553_v41 = vmul.f32 %v1133_v18, %v469_v37 }
  0xeb   : > { %v625_v42 = vmax.f32 %v593_v33, 0.0  ;;  %v607_v43 = vmax.f32 %v575_v34, 0.0  ;;  %v594_v44 = vadd.f32 %v1138_v20, %v555_v35  ;;  %v576_v45 = vadd.f32 %v1138_v20, %v537_v36 }
  0xec   : > { %v935_v46 = vpack.c.bf16 %v609_v38, %v609_v38  ;;  %v623_v47 = vmax.f32 %v591_v39, 0.0  ;;  %v610_v48 = vmax.f32 %v578_v40, 0.0  ;;  %v592_v49 = vadd.f32 %v1138_v20, %v553_v41 }
  0xed   : > { %v951_v50 = vpack.c.bf16 %v625_v42, %v625_v42  ;;  %v933_v51 = vpack.c.bf16 %v607_v43, %v607_v43  ;;  %v626_v52 = vmax.f32 %v594_v44, 0.0  ;;  %v608_v53 = vmax.f32 %v576_v45, 0.0  ;;  %v990_v54 = vpop.f32.mrb[4].mxu0 }
  0xee   : > { %770 = vst.msk [vmem:[%s1158_s30 + $0x8] sm:$0xf] %vm767_vm2, %v935_v46  ;;  %v949_v55 = vpack.c.bf16 %v623_v47, %v623_v47  ;;  %v936_v56 = vpack.c.bf16 %v610_v48, %v610_v48  ;;  %v624_v57 = vmax.f32 %v592_v49, 0.0  ;;  %v542_v58 = vmul.f32 %v990_v54, %v1133_v18  ;;  %v1006_v59 = vpop.f32.mrb[4].mxu1  ;;  %v418_v60 = vpop.f32.mrb[5].mxu0 }
  0xef   : > { %786 = vst.msk [vmem:[%s1158_s30 + $0x48] sm:$0xf] %vm767_vm2, %v951_v50  ;;  %768 = vst.msk [vmem:[%s1158_s30] sm:$0xf] %vm767_vm2, %v933_v51  ;;  %v952_v61 = vpack.c.bf16 %v626_v52, %v626_v52  ;;  %v934_v62 = vpack.c.bf16 %v608_v53, %v608_v53  ;;  %v558_v63 = vmul.f32 %v1006_v59, %v1133_v18  ;;  %v482_v1 = vpop.f32.mrb[5].mxu1  ;;  %v991_v2 = vpop.f32.mrb[6].mxu0 }
  0xf0   : > { %v540_v0 = vmul.f32 %v1133_v18, %v418_v60  ;;  %784 = vst.msk [vmem:[%s1158_s30 + $0x40] sm:$0xf] %vm767_vm2, %v949_v55  ;;  %771 = vst.msk [vmem:[%s1158_s30 + $0xc] sm:$0xf] %vm767_vm2, %v936_v56  ;;  %v950_v3 = vpack.c.bf16 %v624_v57, %v624_v57  ;;  %v581_v4 = vadd.f32 %v1138_v20, %v542_v58  ;;  %v1007_v7 = vpop.f32.mrb[6].mxu1  ;;  %v421_v8 = vpop.f32.mrb[7].mxu0 }
  0xf1   : > { %v556_v5 = vmul.f32 %v1133_v18, %v482_v1  ;;  %v543_v6 = vmul.f32 %v991_v2, %v1133_v18  ;;  %787 = vst.msk [vmem:[%s1158_s30 + $0x4c] sm:$0xf] %vm767_vm2, %v952_v61  ;;  %769 = vst.msk [vmem:[%s1158_s30 + $0x4] sm:$0xf] %vm767_vm2, %v934_v62  ;;  %v597_v9 = vadd.f32 %v1138_v20, %v558_v63  ;;  %v485_v13 = vpop.f32.mrb[7].mxu1 }
  0xf2   : > { %v579_v10 = vadd.f32 %v1138_v20, %v540_v0  ;;  %v559_v11 = vmul.f32 %v1007_v7, %v1133_v18  ;;  %v541_v12 = vmul.f32 %v1133_v18, %v421_v8  ;;  %785 = vst.msk [vmem:[%s1158_s30 + $0x44] sm:$0xf] %vm767_vm2, %v950_v3  ;;  %v613_v14 = vmax.f32 %v581_v4, 0.0 }
  0xf3   : > { %v595_v15 = vadd.f32 %v1138_v20, %v556_v5  ;;  %v582_v16 = vadd.f32 %v1138_v20, %v543_v6  ;;  %v557_v17 = vmul.f32 %v1133_v18, %v485_v13  ;;  %v629_v19 = vmax.f32 %v597_v9, 0.0 }
  0xf4   : > { %v611_v21 = vmax.f32 %v579_v10, 0.0  ;;  %v598_v22 = vadd.f32 %v1138_v20, %v559_v11  ;;  %v580_v23 = vadd.f32 %v1138_v20, %v541_v12  ;;  %v939_v24 = vpack.c.bf16 %v613_v14, %v613_v14 }
  0xf5   : > { %v627_v25 = vmax.f32 %v595_v15, 0.0  ;;  %v614_v26 = vmax.f32 %v582_v16, 0.0  ;;  %v596_v27 = vadd.f32 %v1138_v20, %v557_v17  ;;  %v955_v28 = vpack.c.bf16 %v629_v19, %v629_v19  ;;  %v994_v32 = vpop.f32.mrb[8].mxu0 }
  0xf6   : > { %v937_v29 = vpack.c.bf16 %v611_v21, %v611_v21  ;;  %v630_v30 = vmax.f32 %v598_v22, 0.0  ;;  %v612_v31 = vmax.f32 %v580_v23, 0.0  ;;  %774 = vst.msk [vmem:[%s1158_s30 + $0x18] sm:$0xf] %vm767_vm2, %v939_v24  ;;  %v546_v36 = vmul.f32 %v994_v32, %v1133_v18  ;;  %v1010_v37 = vpop.f32.mrb[8].mxu1  ;;  %v434_v38 = vpop.f32.mrb[9].mxu0 }
  0xf7   : > { %v953_v33 = vpack.c.bf16 %v627_v25, %v627_v25  ;;  %v940_v34 = vpack.c.bf16 %v614_v26, %v614_v26  ;;  %v628_v35 = vmax.f32 %v596_v27, 0.0  ;;  %790 = vst.msk [vmem:[%s1158_s30 + $0x58] sm:$0xf] %vm767_vm2, %v955_v28  ;;  %v562_v41 = vmul.f32 %v1010_v37, %v1133_v18  ;;  %v498_v43 = vpop.f32.mrb[9].mxu1  ;;  %v995_v44 = vpop.f32.mrb[10].mxu0 }
  0xf8   : > { %772 = vst.msk [vmem:[%s1158_s30 + $0x10] sm:$0xf] %vm767_vm2, %v937_v29  ;;  %v956_v39 = vpack.c.bf16 %v630_v30, %v630_v30  ;;  %v938_v40 = vpack.c.bf16 %v612_v31, %v612_v31  ;;  %v544_v42 = vmul.f32 %v1133_v18, %v434_v38  ;;  %v585_v46 = vadd.f32 %v1138_v20, %v546_v36  ;;  %v1011_v49 = vpop.f32.mrb[10].mxu1  ;;  %v437_v50 = vpop.f32.mrb[11].mxu0 }
  0xf9   : > { %788 = vst.msk [vmem:[%s1158_s30 + $0x50] sm:$0xf] %vm767_vm2, %v953_v33  ;;  %775 = vst.msk [vmem:[%s1158_s30 + $0x1c] sm:$0xf] %vm767_vm2, %v940_v34  ;;  %v954_v45 = vpack.c.bf16 %v628_v35, %v628_v35  ;;  %v560_v47 = vmul.f32 %v1133_v18, %v498_v43  ;;  %v547_v48 = vmul.f32 %v995_v44, %v1133_v18  ;;  %v501_v55 = vpop.f32.mrb[11].mxu1 }
  0xfa   : > { %791 = vst.msk [vmem:[%s1158_s30 + $0x5c] sm:$0xf] %vm767_vm2, %v956_v39  ;;  %773 = vst.msk [vmem:[%s1158_s30 + $0x14] sm:$0xf] %vm767_vm2, %v938_v40  ;;  %v601_v51 = vadd.f32 %v1138_v20, %v562_v41  ;;  %v583_v52 = vadd.f32 %v1138_v20, %v544_v42  ;;  %v563_v53 = vmul.f32 %v1011_v49, %v1133_v18  ;;  %v617_v56 = vmax.f32 %v585_v46, 0.0 }
  0xfb   : > { %v545_v54 = vmul.f32 %v1133_v18, %v437_v50  ;;  %789 = vst.msk [vmem:[%s1158_s30 + $0x54] sm:$0xf] %vm767_vm2, %v954_v45  ;;  %v599_v57 = vadd.f32 %v1138_v20, %v560_v47  ;;  %v586_v58 = vadd.f32 %v1138_v20, %v547_v48  ;;  %v561_v59 = vmul.f32 %v1133_v18, %v501_v55 }
  0xfc   : > { %v633_v60 = vmax.f32 %v601_v51, 0.0  ;;  %v615_v61 = vmax.f32 %v583_v52, 0.0  ;;  %v602_v62 = vadd.f32 %v1138_v20, %v563_v53  ;;  %v943_v0 = vpack.c.bf16 %v617_v56, %v617_v56 }
  0xfd   : > { %v584_v63 = vadd.f32 %v1138_v20, %v545_v54  ;;  %v631_v1 = vmax.f32 %v599_v57, 0.0  ;;  %v618_v2 = vmax.f32 %v586_v58, 0.0  ;;  %v600_v3 = vadd.f32 %v1138_v20, %v561_v59  ;;  %v998_v8 = vpop.f32.mrb[12].mxu0 }
  0xfe   : > { %v959_v4 = vpack.c.bf16 %v633_v60, %v633_v60  ;;  %v941_v5 = vpack.c.bf16 %v615_v61, %v615_v61  ;;  %v634_v6 = vmax.f32 %v602_v62, 0.0  ;;  %778 = vst.msk [vmem:[%s1158_s30 + $0x28] sm:$0xf] %vm767_vm2, %v943_v0  ;;  %v550_v12 = vmul.f32 %v998_v8, %v1133_v18  ;;  %v1014_v13 = vpop.f32.mrb[12].mxu1  ;;  %v450_v14 = vpop.f32.mrb[13].mxu0 }
  0xff   : > { %v616_v7 = vmax.f32 %v584_v63, 0.0  ;;  %v957_v9 = vpack.c.bf16 %v631_v1, %v631_v1  ;;  %v944_v10 = vpack.c.bf16 %v618_v2, %v618_v2  ;;  %v632_v11 = vmax.f32 %v600_v3, 0.0  ;;  %v514_v21 = vpop.f32.mrb[13].mxu1  ;;  %v999_v22 = vpop.f32.mrb[14].mxu0 }
 0x100   : > { %794 = vst.msk [vmem:[%s1158_s30 + $0x68] sm:$0xf] %vm767_vm2, %v959_v4  ;;  %776 = vst.msk [vmem:[%s1158_s30 + $0x20] sm:$0xf] %vm767_vm2, %v941_v5  ;;  %v960_v15 = vpack.c.bf16 %v634_v6, %v634_v6  ;;  %v566_v17 = vmul.f32 %v1014_v13, %v1133_v18  ;;  %v548_v19 = vmul.f32 %v1133_v18, %v450_v14  ;;  %v1015_v27 = vpop.f32.mrb[14].mxu1  ;;  %v453_v28 = vpop.f32.mrb[15].mxu0 }
 0x101   : > { %v942_v16 = vpack.c.bf16 %v616_v7, %v616_v7  ;;  %792 = vst.msk [vmem:[%s1158_s30 + $0x60] sm:$0xf] %vm767_vm2, %v957_v9  ;;  %779 = vst.msk [vmem:[%s1158_s30 + $0x2c] sm:$0xf] %vm767_vm2, %v944_v10  ;;  %v958_v23 = vpack.c.bf16 %v632_v11, %v632_v11  ;;  %v589_v24 = vadd.f32 %v1138_v20, %v550_v12  ;;  %v517_v33 = vpop.f32.mrb[15].mxu1 }
 0x102   : > { %v564_v25 = vmul.f32 %v1133_v18, %v514_v21  ;;  %v551_v26 = vmul.f32 %v999_v22, %v1133_v18  ;;  %795 = vst.msk [vmem:[%s1158_s30 + $0x6c] sm:$0xf] %vm767_vm2, %v960_v15  ;;  %v605_v29 = vadd.f32 %v1138_v20, %v566_v17  ;;  %v587_v30 = vadd.f32 %v1138_v20, %v548_v19 }
 0x103   : > { %777 = vst.msk [vmem:[%s1158_s30 + $0x24] sm:$0xf] %vm767_vm2, %v942_v16  ;;  %v567_v31 = vmul.f32 %v1015_v27, %v1133_v18  ;;  %v549_v32 = vmul.f32 %v1133_v18, %v453_v28  ;;  %793 = vst.msk [vmem:[%s1158_s30 + $0x64] sm:$0xf] %vm767_vm2, %v958_v23  ;;  %v621_v34 = vmax.f32 %v589_v24, 0.0  ;;  %v565_v37 = vmul.f32 %v1133_v18, %v517_v33 }
 0x104   : > { %v603_v35 = vadd.f32 %v1138_v20, %v564_v25  ;;  %v590_v36 = vadd.f32 %v1138_v20, %v551_v26  ;;  %v637_v38 = vmax.f32 %v605_v29, 0.0  ;;  %v619_v39 = vmax.f32 %v587_v30, 0.0 }
 0x105   : > { %v606_v40 = vadd.f32 %v1138_v20, %v567_v31  ;;  %v588_v41 = vadd.f32 %v1138_v20, %v549_v32  ;;  %v947_v42 = vpack.c.bf16 %v621_v34, %v621_v34  ;;  %v604_v45 = vadd.f32 %v1138_v20, %v565_v37 }
 0x106   : > { %v635_v43 = vmax.f32 %v603_v35, 0.0  ;;  %v622_v44 = vmax.f32 %v590_v36, 0.0  ;;  %v963_v46 = vpack.c.bf16 %v637_v38, %v637_v38  ;;  %v945_v47 = vpack.c.bf16 %v619_v39, %v619_v39 }
 0x107   : > { %v638_v18 = vmax.f32 %v606_v40, 0.0  ;;  %v620_v48 = vmax.f32 %v588_v41, 0.0  ;;  %782 = vst.msk [vmem:[%s1158_s30 + $0x38] sm:$0xf] %vm767_vm2, %v947_v42  ;;  %v636_v51 = vmax.f32 %v604_v45, 0.0 }
 0x108   : > { %v961_v49 = vpack.c.bf16 %v635_v43, %v635_v43  ;;  %v948_v50 = vpack.c.bf16 %v622_v44, %v622_v44  ;;  %798 = vst.msk [vmem:[%s1158_s30 + $0x78] sm:$0xf] %vm767_vm2, %v963_v46  ;;  %780 = vst.msk [vmem:[%s1158_s30 + $0x30] sm:$0xf] %vm767_vm2, %v945_v47 }
 0x109   : > { %v964_v52 = vpack.c.bf16 %v638_v18, %v638_v18  ;;  %v946_v53 = vpack.c.bf16 %v620_v48, %v620_v48  ;;  %v962_v20 = vpack.c.bf16 %v636_v51, %v636_v51 }
 0x10a   : > { %796 = vst.msk [vmem:[%s1158_s30 + $0x70] sm:$0xf] %vm767_vm2, %v961_v49  ;;  %783 = vst.msk [vmem:[%s1158_s30 + $0x3c] sm:$0xf] %vm767_vm2, %v948_v50 }
 0x10b   : > { %799 = vst.msk [vmem:[%s1158_s30 + $0x7c] sm:$0xf] %vm767_vm2, %v964_v52  ;;  %781 = vst.msk [vmem:[%s1158_s30 + $0x34] sm:$0xf] %vm767_vm2, %v946_v53 }
 0x10c   : > { %797 = vst.msk [vmem:[%s1158_s30 + $0x74] sm:$0xf] %vm767_vm2, %v962_v20 }
 0x10d PF: > { %s14_s15 = sadd.s32 1, %s1050_s15  }
 0x10e   : > { %p11_p4 = scmp.ge.s32.totalorder %s14_s15, 4  }
 0x110   :  { %13 = sbr.rel (!%p11_p4) target bundleno = 1 (0x1), region = 66 }

</bundles_post_ra>
